<compile_context>
chip_gen: v5e
topology: v5e:2x2
jax: 0.10.0
libtpu: 0.0.40
codegen_flags: <defaults>
</compile_context>

<pallas_src>
import jax
import jax.numpy as jnp
from jax import lax
from jax.experimental import pallas as pl
from jax.experimental.pallas import tpu as pltpu


# ----------------------------------------------------------------------------- helpers
def get_2d_padding(kernel_size, dilation=(1, 1)):
    return ((kernel_size[0] - 1) * dilation[0] // 2,
            (kernel_size[1] - 1) * dilation[1] // 2)


def _round_up(x, m):
    return -(-x // m) * m


# ----------------------------------------------------------------------------- STFT kernel
def _make_stft_kernel(Tn, R):
    def kernel(x_ref, d_ref, o_ref):
        # x_ref: (1, Th, hop) hop-folded signal; d_ref: (n_fft, 2F) window-folded DFT.
        # frame t = signal[t*hop : t*hop + n_fft] == concat_j folded[t + j, :]
        frames = jnp.concatenate(
            [x_ref[0, pl.ds(j, Tn), :] for j in range(R)], axis=-1)    # (Tn, n_fft)
        o_ref[0] = jnp.dot(frames, d_ref[...],
                           preferred_element_type=jnp.float32)         # (Tn, 2F)
    return kernel


def pallas_stft(signal, dft, n_fft, hop):
    """signal: (B*C, T) -> (B*C, Tn, 2F) with interleaved [re, im] columns."""
    BC, T = signal.shape
    Tn = 1 + (T - n_fft) // hop
    R = n_fft // hop
    Th = -(-T // hop)
    sig = jnp.pad(signal, ((0, 0), (0, Th * hop - T))).reshape(BC, Th, hop)
    F2 = dft.shape[1]
    return pl.pallas_call(
        _make_stft_kernel(Tn, R),
        out_shape=jax.ShapeDtypeStruct((BC, Tn, F2), jnp.float32),
        grid=(BC,),
        in_specs=[
            pl.BlockSpec((1, Th, hop), lambda b: (b, 0, 0)),
            pl.BlockSpec((n_fft, F2), lambda b: (0, 0)),
        ],
        out_specs=pl.BlockSpec((1, Tn, F2), lambda b: (b, 0, 0)),
        compiler_params=pltpu.CompilerParams(
            dimension_semantics=("parallel",),
            vmem_limit_bytes=32 * 1024 * 1024),
    )(sig, dft)


# ----------------------------------------------------------------------------- conv kernel
def _make_conv_kernel(tile_m, offsets, apply_act, slope):
    def kernel(x_ref, w_ref, b_ref, o_ref):
        # x_ref: (1, L, C2)  flattened (time * folded-freq, channel) padded input
        #        (same block for every row tile -> stays resident in VMEM)
        # w_ref: (KH*Q*C2, Cout) folded weights, b_ref: (1, Cout)
        # o_ref: (1, tile_m, Cout) one row tile of the flattened output
        base = pl.program_id(1) * tile_m
        if tile_m % 8 == 0:
            base = pl.multiple_of(base, 8)
        patches = jnp.concatenate(
            [x_ref[0, pl.ds(base + off, tile_m), :] for off in offsets],
            axis=-1)                                                    # (tile_m, K)
        out = jnp.dot(patches, w_ref[...],
                      preferred_element_type=jnp.float32) + b_ref[...]
        if apply_act:
            out = jnp.where(out >= 0, out, slope * out)                 # LeakyReLU
        o_ref[0] = out.astype(o_ref.dtype)
    return kernel


def _pick_tile_rows(M, K, Cout, max_tile_rows=None, budget_bytes=4 << 20):
    """Rows per grid step so the im2col patch matrix stays within a VMEM budget."""
    if max_tile_rows is not None:
        rows = max(8, (max_tile_rows // 8) * 8)
    else:
        rows = budget_bytes // (4 * (K + Cout))
        rows = max(8, min(rows, 2048))
        rows = (rows // 8) * 8
    if rows >= M:
        return M, 1                       # single tile: block equals full dim
    return rows, -(-M // rows)


def pallas_conv2d(x_nhwc, w, b, *, stride, dilation, padding, apply_act,
                  slope=0.2, max_tile_rows=None):
    N, H, W, Cin = x_nhwc.shape
    KH, KW, _, Cout = w.shape
    ph, pw = padding
    dh, dw = dilation
    sh, sw = stride
    assert dw == 1 and sh == 1, "this module only dilates time and strides frequency"

    xp = jnp.pad(x_nhwc, ((0, 0), (ph, ph), (pw, pw), (0, 0)))
    Hp, Wp = H + 2 * ph, W + 2 * pw
    Ho = Hp - dh * (KH - 1)                  # time output rows (time stride 1)
    Wo = (Wp - KW) // sw + 1                 # freq output cols (strided)

    # Fold the frequency stride into channels: a stride-sw conv equals a stride-1
    # conv over x reshaped to (.., Wp/sw, sw*Cin) with correspondingly re-packed
    # (zero-padded) weights.  All reshapes below are free metadata ops in XLA.
    Q = -(-KW // sw)                         # folded kernel width
    C2 = sw * Cin
    Wq = -(-Wp // sw)                        # folded freq width
    xp = jnp.pad(xp, ((0, 0), (0, 0), (0, Wq * sw - Wp), (0, 0)))
    xf = xp.reshape(N, Hp, Wq, C2).reshape(N, Hp * Wq, C2)

    # im2col over the flattened (time, folded-freq) axis: for tap (kh, q) the patch
    # rows for every output position are one contiguous slice at offset kh*dh*Wq + q.
    # Columns Wo..Wq-1 of each output time row are junk and are sliced off below
    # (a few % extra MXU work, zero relayout cost inside the kernel).
    offsets = [kh * dh * Wq + q for kh in range(KH) for q in range(Q)]
    K = KH * Q * C2
    M = Ho * Wq
    tile_m, n_t = _pick_tile_rows(M, K, Cout, max_tile_rows)
    M_pad = tile_m * n_t

    L = _round_up(Hp * Wq + Q - 1 + (M_pad - M), 8)
    xf = jnp.pad(xf, ((0, 0), (0, L - Hp * Wq), (0, 0)))

    wf = jnp.pad(w, ((0, 0), (0, Q * sw - KW), (0, 0), (0, 0)))      # (KH, Q*sw, Cin, Cout)
    wf = wf.reshape(KH, Q, C2, Cout).reshape(K, Cout)

    out = pl.pallas_call(
        _make_conv_kernel(tile_m, offsets, apply_act, slope),
        out_shape=jax.ShapeDtypeStruct((N, M_pad, Cout), jnp.float32),
        grid=(N, n_t),
        in_specs=[
            pl.BlockSpec((1, L, C2), lambda n, t: (n, 0, 0)),        # resident per batch
            pl.BlockSpec((K, Cout), lambda n, t: (0, 0)),            # resident weights
            pl.BlockSpec((1, Cout), lambda n, t: (0, 0)),            # resident bias
        ],
        out_specs=pl.BlockSpec((1, tile_m, Cout), lambda n, t: (n, t, 0)),
        compiler_params=pltpu.CompilerParams(
            dimension_semantics=("parallel", "arbitrary"),
            vmem_limit_bytes=32 * 1024 * 1024),
    )(xf, wf, b)
    return out[:, :M, :].reshape(N, Ho, Wq, Cout)[:, :, :Wo, :]


# ----------------------------------------------------------------------------- module
class DiscriminatorSTFTPallas:
    def __init__(self, filters, in_channels=1, out_channels=1, n_fft=1024,
                 hop_length=256, win_length=1024, max_filters=1024, filters_scale=1,
                 kernel_size=(3, 9), dilations=(1, 2, 4), stride=(1, 2),
                 normalized=True, negative_slope=0.2, key=None):
        assert win_length == n_fft       # TODO(synk): center-padded window for win_length < n_fft
        assert n_fft % hop_length == 0   # in-kernel framing uses a hop-folded signal view
        self.in_channels = in_channels
        self.n_fft = n_fft
        self.hop_length = hop_length
        self.normalized = normalized
        self.negative_slope = negative_slope

        # Window-folded, normalized, interleaved DFT matrix:
        #   dft[:, 2k] = win*cos(2*pi*n*k/N)*norm ; dft[:, 2k+1] = -win*sin(...)*norm
        # so frames @ dft gives the normalized windowed onesided STFT with [re, im]
        # interleaved along the lane dim -> NHWC spectrogram is a free reshape.
        n = jnp.arange(n_fft, dtype=jnp.float32)
        win = 0.5 - 0.5 * jnp.cos(2.0 * jnp.pi * n / n_fft)          # periodic hann
        Fb = n_fft // 2 + 1
        k = jnp.arange(Fb, dtype=jnp.float32)
        ang = 2.0 * jnp.pi * jnp.outer(n, k) / n_fft
        scale = win[:, None]
        if normalized:
            scale = scale / jnp.sqrt(jnp.sum(win ** 2))
        self.dft = jnp.stack([jnp.cos(ang) * scale, -jnp.sin(ang) * scale],
                             axis=-1).reshape(n_fft, 2 * Fb)

        # --- conv layer configuration (mirrors the PyTorch __init__)
        layers = []
        spec_channels = 2 * in_channels
        layers.append(dict(k=kernel_size, s=(1, 1), d=(1, 1),
                           p=get_2d_padding(kernel_size),
                           cin=spec_channels, cout=filters, act=True))
        in_chs = min(filters_scale * filters, max_filters)
        for i, dil in enumerate(dilations):
            out_chs = min(filters_scale ** (i + 1) * filters, max_filters)
            layers.append(dict(k=kernel_size, s=stride, d=(dil, 1),
                               p=get_2d_padding(kernel_size, (dil, 1)),
                               cin=in_chs, cout=out_chs, act=True))
            in_chs = out_chs
        out_chs = min(filters_scale ** (len(dilations) + 1) * filters, max_filters)
        ks2 = (kernel_size[0], kernel_size[0])
        layers.append(dict(k=ks2, s=(1, 1), d=(1, 1), p=get_2d_padding(ks2),
                           cin=in_chs, cout=out_chs, act=True))
        layers.append(dict(k=ks2, s=(1, 1), d=(1, 1), p=get_2d_padding(ks2),
                           cin=out_chs, cout=out_channels, act=False))   # conv_post
        self.layer_cfgs = layers

        # --- deterministic synthetic parameters (weight_norm is an init-time reparam)
        key = jax.random.PRNGKey(0) if key is None else key
        keys = jax.random.split(key, 2 * len(layers))
        self.params = []
        for i, cfg in enumerate(layers):
            kh, kw = cfg["k"]
            w = 0.1 * jax.random.normal(keys[2 * i], (kh, kw, cfg["cin"], cfg["cout"]),
                                        jnp.float32)
            b = 0.01 * jax.random.normal(keys[2 * i + 1], (1, cfg["cout"]), jnp.float32)
            self.params.append((w, b))

    def _spectrogram_nhwc(self, x):
        B, C, T = x.shape
        spec = pallas_stft(x.reshape(B * C, T), self.dft, self.n_fft, self.hop_length)
        Tn, F2 = spec.shape[1], spec.shape[2]
        Fb = F2 // 2
        z = spec.reshape(B, C, Tn, Fb, 2)
        # -> (B, T', F, [re_c0..re_cC-1, im_c0..im_cC-1]) : same channel order as
        # torch.cat([z.real, z.imag], dim=1); for C == 1 this is layout-free.
        return jnp.transpose(z, (0, 2, 3, 4, 1)).reshape(B, Tn, Fb, 2 * C)

    def __call__(self, x):
        z = self._spectrogram_nhwc(x)
        fmap = []
        for cfg, (w, b) in zip(self.layer_cfgs, self.params):
            z = pallas_conv2d(z, w, b, stride=cfg["s"], dilation=cfg["d"],
                              padding=cfg["p"], apply_act=cfg["act"],
                              slope=self.negative_slope)
            if cfg["act"]:
                fmap.append(z)
        # return NCHW, matching the PyTorch module's (b, c, t, w) outputs
        z_nchw = jnp.transpose(z, (0, 3, 1, 2))
        fmap_nchw = [jnp.transpose(f, (0, 3, 1, 2)) for f in fmap]
        return z_nchw, fmap_nchw


# ----------------------------------------------------------------------------- pure-JAX reference
def reference_forward(model, x):
    B, C, T = x.shape
    n_fft, hop = model.n_fft, model.hop_length
    Tn = 1 + (T - n_fft) // hop
    xr = x.reshape(B * C, T)
    frames = jnp.stack(
        [xr[:, t * hop:t * hop + n_fft] for t in range(Tn)], axis=1)   # (BC, Tn, n_fft)
    n = jnp.arange(n_fft, dtype=jnp.float32)
    win = 0.5 - 0.5 * jnp.cos(2.0 * jnp.pi * n / n_fft)
    Fb = n_fft // 2 + 1
    k = jnp.arange(Fb, dtype=jnp.float32)
    ang = 2.0 * jnp.pi * jnp.outer(n, k) / n_fft
    fw = frames * win
    re = fw @ jnp.cos(ang)
    im = fw @ (-jnp.sin(ang))
    if model.normalized:
        norm = 1.0 / jnp.sqrt(jnp.sum(win ** 2))
        re, im = re * norm, im * norm
    re = re.reshape(B, C, Tn, Fb)
    im = im.reshape(B, C, Tn, Fb)
    z = jnp.transpose(jnp.concatenate([re, im], axis=1), (0, 2, 3, 1))  # NHWC
    fmap = []
    for cfg, (w, b) in zip(model.layer_cfgs, model.params):
        ph, pw = cfg["p"]
        z = lax.conv_general_dilated(
            z, w, window_strides=cfg["s"], padding=[(ph, ph), (pw, pw)],
            rhs_dilation=cfg["d"],
            dimension_numbers=("NHWC", "HWIO", "NHWC")) + b.reshape(1, 1, 1, -1)
        if cfg["act"]:
            z = jnp.where(z >= 0, z, model.negative_slope * z)
            fmap.append(z)
    return (jnp.transpose(z, (0, 3, 1, 2)),
            [jnp.transpose(f, (0, 3, 1, 2)) for f in fmap])


# ----------------------------------------------------------------------------- main
if __name__ == "__main__":
    root = jax.random.PRNGKey(0)
    k_param, k_x = jax.random.split(root)
    model = DiscriminatorSTFTPallas(filters=4, in_channels=1, out_channels=1,
                                    n_fft=32, hop_length=8, win_length=32,
                                    key=k_param)
    # small audio input: batch=2, channels=1, T=88 -> 8 STFT frames, 17 freq bins
    x = jax.random.normal(k_x, (2, 1, 88), jnp.float32)

    z, fmap = model(x)
    jax.block_until_ready(z)

    z_ref, fmap_ref = reference_forward(model, x)
    assert z.shape == z_ref.shape == (2, 1, 8, 3)
    assert len(fmap) == len(fmap_ref) == 5
    ok = bool(jnp.allclose(z, z_ref, atol=1e-4, rtol=1e-4))
    for a, r in zip(fmap, fmap_ref):
        ok = ok and a.shape == r.shape and bool(jnp.allclose(a, r, atol=1e-4, rtol=1e-4))

    # Explicitly exercise the multi-row-tile conv path (several grid steps per batch
    # element, padded M) and check it against lax.conv on the first layer.
    cfg0 = model.layer_cfgs[0]
    w0, b0 = model.params[0]
    z0 = model._spectrogram_nhwc(x)
    y_tiled = pallas_conv2d(z0, w0, b0, stride=cfg0["s"], dilation=cfg0["d"],
                            padding=cfg0["p"], apply_act=cfg0["act"],
                            slope=model.negative_slope, max_tile_rows=32)
    jax.block_until_ready(y_tiled)
    ph, pw = cfg0["p"]
    y_ref = lax.conv_general_dilated(
        z0, w0, window_strides=cfg0["s"], padding=[(ph, ph), (pw, pw)],
        rhs_dilation=cfg0["d"],
        dimension_numbers=("NHWC", "HWIO", "NHWC")) + b0.reshape(1, 1, 1, -1)
    y_ref = jnp.where(y_ref >= 0, y_ref, model.negative_slope * y_ref)
    ok = ok and y_tiled.shape == y_ref.shape
    ok = ok and bool(jnp.allclose(y_tiled, y_ref, atol=1e-4, rtol=1e-4))

    if not ok:
        raise AssertionError("Pallas output does not match reference")
    print("KERNEL_OK")
</pallas_src>

<mosaic_0001>
module attributes {stable_mosaic.version = 11 : i64} {
  func.func @kernel(%arg0: i32, %arg1: memref<1x11x8xf32, #tpu.memory_space<vmem>>, %arg2: memref<32x34xf32, #tpu.memory_space<vmem>>, %arg3: memref<1x8x34xf32, #tpu.memory_space<vmem>>) attributes {dimension_semantics = [#tpu.dimension_semantics<parallel>], iteration_bounds = array<i64: 2>, scalar_prefetch = 0 : i64, scratch_operands = 0 : i64, tpu.core_type = #tpu.core_type<tc>, window_params = [{transform_indices = @transform_0, window_bounds = array<i64: 1, 11, 8>}, {pipeline_mode = #tpu.pipeline_mode<synchronous>, transform_indices = @transform_1, window_bounds = array<i64: 32, 34>}, {transform_indices = @transform_2, window_bounds = array<i64: 1, 8, 34>}]} {
    %c0 = arith.constant 0 : index
    %c0_0 = arith.constant 0 : index
    %c0_1 = arith.constant 0 : index
    %0 = vector.load %arg1[%c0, %c0_0, %c0_1] : memref<1x11x8xf32, #tpu.memory_space<vmem>>, vector<1x8x8xf32>
    %1 = vector.shape_cast %0 : vector<1x8x8xf32> to vector<8x8xf32>
    %c0_2 = arith.constant 0 : index
    %c1 = arith.constant 1 : index
    %c0_3 = arith.constant 0 : index
    %2 = vector.load %arg1[%c0_2, %c1, %c0_3] : memref<1x11x8xf32, #tpu.memory_space<vmem>>, vector<1x8x8xf32>
    %3 = vector.shape_cast %2 : vector<1x8x8xf32> to vector<8x8xf32>
    %c0_4 = arith.constant 0 : index
    %c2 = arith.constant 2 : index
    %c0_5 = arith.constant 0 : index
    %4 = vector.load %arg1[%c0_4, %c2, %c0_5] : memref<1x11x8xf32, #tpu.memory_space<vmem>>, vector<1x8x8xf32>
    %5 = vector.shape_cast %4 : vector<1x8x8xf32> to vector<8x8xf32>
    %c0_6 = arith.constant 0 : index
    %c3 = arith.constant 3 : index
    %c0_7 = arith.constant 0 : index
    %6 = vector.load %arg1[%c0_6, %c3, %c0_7] : memref<1x11x8xf32, #tpu.memory_space<vmem>>, vector<1x8x8xf32>
    %7 = vector.shape_cast %6 : vector<1x8x8xf32> to vector<8x8xf32>
    %8 = tpu.concatenate %1, %3, %5, %7 in 1 : vector<8x8xf32>, vector<8x8xf32>, vector<8x8xf32>, vector<8x8xf32> -> vector<8x32xf32>
    %c0_8 = arith.constant 0 : index
    %c0_9 = arith.constant 0 : index
    %9 = vector.load %arg2[%c0_8, %c0_9] : memref<32x34xf32, #tpu.memory_space<vmem>>, vector<32x34xf32>
    %cst = arith.constant dense<0.000000e+00> : vector<8x34xf32>
    %10 = tpu.matmul %8, %9, %cst {dimension_numbers = #tpu.dot_dimension_numbers<[1], [0], [0], [1], [0, 0, 1, 1], [], []>} : vector<8x32xf32>, vector<32x34xf32>, vector<8x34xf32> -> vector<8x34xf32>
    %c0_10 = arith.constant 0 : index
    %c0_11 = arith.constant 0 : index
    %c0_12 = arith.constant 0 : index
    %11 = vector.load %arg3[%c0_10, %c0_11, %c0_12] : memref<1x8x34xf32, #tpu.memory_space<vmem>>, vector<1x8x34xf32>
    %12 = vector.shape_cast %11 : vector<1x8x34xf32> to vector<8x34xf32>
    %13 = vector.shape_cast %10 : vector<8x34xf32> to vector<1x8x34xf32>
    tpu.vector_store %arg3[%c0_10, %c0_11, %c0_12], %13 {strides = array<i32>} : memref<1x8x34xf32, #tpu.memory_space<vmem>>, vector<1x8x34xf32>,
    return
  }
  func.func @transform_0(%arg0: i32) -> (i32, i32, i32) {
    %c0_i32 = arith.constant 0 : i32
    %c0_i32_0 = arith.constant 0 : i32
    %c0_i32_1 = arith.constant 0 : i32
    return %arg0, %c0_i32, %c0_i32_0 : i32, i32, i32
  }
  func.func @transform_1(%arg0: i32) -> (i32, i32) {
    %c0_i32 = arith.constant 0 : i32
    %c0_i32_0 = arith.constant 0 : i32
    %c0_i32_1 = arith.constant 0 : i32
    return %c0_i32, %c0_i32_0 : i32, i32
  }
  func.func @transform_2(%arg0: i32) -> (i32, i32, i32) {
    %c0_i32 = arith.constant 0 : i32
    %c0_i32_0 = arith.constant 0 : i32
    %c0_i32_1 = arith.constant 0 : i32
    return %arg0, %c0_i32, %c0_i32_0 : i32, i32, i32
  }
}

</mosaic_0001>

<bundles_post_ra>
// kernel: tpu_custom_call.1
= control target key start
LH: loop header
LB: loop body
LE: loop exit
PB: predicated region body
PF: predicated region fallthrough
CT: control target
= control target key end

     0   :  { %7 = vsyncpa [#allocation3], 0  ;;  %s503_s0 = inlined_call_operand.vmem [shape: f32[2,11,8], index: 0, kind: input, shape index: {}]   ;;  %s504_s1 = inlined_call_operand.vmem [shape: f32[32,34], index: 1, kind: input, shape index: {}]   ;;  %s505_s2 = inlined_call_operand.hbm [shape: f32[2,8,34], index: 2, kind: output, shape index: {}]  }
   0x1   :  { %9 = vsyncpa [#allocation3 + $0x1], 0  ;;  %s406_s9 = smov 0   ;;  %s408_s10 = smov 0  }
   0x2   :  { %s410_s11 = smov 0   ;;  %s412_s12 = smov 0  }
   0x3 LB: > { %s427_s13 = sadd.s32 4294967295, %s386_s12   ;;  %s269_s14 = sadd.s32 4294967294, %s386_s12   ;;  %s386_s12 = sphi %s412_s12, %s511_s12   ;;  %s382_s11 = sphi %s410_s11, %s510_s11   ;;  %s378_s10 = sphi %s408_s10, %s509_s10   ;;  %s374_s9 = sphi %s406_s9, %s508_s9  }
   0x4   : > { %s431_s15 = sadd.s32 1, %s386_s12   ;;  %s69_s16 = sadd.s32 1, %s382_s11 }
   0x5   : > { %s66_s17 = ssub.s32 %s386_s12, %s431_s15  ;;  %p79_p0 = scmp.ne.s32.totalorder %s382_s11, %s378_s10 }
   0x6   : > { %p67_p1 = scmp.eq.s32.totalorder %s66_s17, 0  ;;  %p80_p2 = scmp.eq.s32.totalorder %s427_s13, 1 }
   0x7   : > { %p85_p3 = scmp.ne.s32.totalorder %s378_s10, %s374_s9  ;;  %p86_p4 = scmp.eq.s32.totalorder %s269_s14, 1 }
   0x8   : > { %s442_s18 = scalar_select %p67_p1, %s382_s11, %s69_s16  }
   0x9   : > { %p444_p5 = por %p80_p2, %p79_p0  ;;  %p448_p6 = por %p86_p4, %p85_p3 }
   0xa   : > { %p272_p7 = scmp.ge.s32.totalorder %s386_s12, 1  ;;  %p115_p8 = scmp.lt.s32.totalorder %s386_s12, 3 }
   0xc   : > { %p116_p9 = pnand %p272_p7, %p115_p8 }
   0xd   : > { %p137_p10 = scmp.lt.s32.totalorder (!%p116_p9), %s427_s13, 1  ;;  %s388_s26 = smov (!%p116_p9), 8  }
   0xe   : > { %119 = sbr.rel (%p116_p9) target bundleno = 278 (0x116), region = 28  ;;  %s389_s27 = smov (!%p116_p9), 24  }
   0xf   : > { %s390_s28 = smov (!%p116_p9), 16   ;;  %s134_s14 = sand.u32 (!%p116_p9), 1, %s378_s10  }
  0x10   : > { %s273_s16 = sshll.u32 (!%p116_p9), %s134_s14, 3  ;;  %s278_s17 = sshll.u32 (!%p116_p9), %s427_s13, 3 }
  0x11   : > { %s205_s23 = scalar_lea.hbm (!%p116_p9), %s505_s2, %s278_s17  ;;  %s136_s24 = scalar_lea.vmem (!%p116_p9), [#allocation2], %s273_s16 }
  0x12   : > { %s344_s3 = scalar_lea.hbm (!%p116_p9), %s505_s2, 16 }
  0x13   : > { %s138_s21 = scalar_select %p137_p10, %s427_s13, 1  ;;  %v167_v3 = vld [vmem:[%s504_s1 + $0x18] sm:$0xff]  ;;  %v166_v4 = vld [vmem:[%s504_s1 + $0x10] sm:$0xff]  ;;  %v165_v5 = vld [vmem:[%s504_s1 + $0x8] sm:$0xff]  ;;  %vm158_vm0 = vcmask 64512   ;;  %vm160_vm1 = vcmask 130048  }
  0x14   : > { %184 = vmatpush.msra.mxu0 %v167_v3  ;;  %v164_v6 = vld [vmem:[%s504_s1] sm:$0xff]  ;;  %vm162_vm2 = vcmask 195584   ;;  %vm168_vm3 = vcmask 261120   ;;  %vm192_vm4 = vcmask 277504  }
  0x15   : > { %s281_s22 = sshll.u32 %s138_s21, 4 }
  0x16   : > { %s141_s25 = scalar_lea.vmem %s503_s0, %s281_s22  ;;  %185 = vmatpush.msra.mxu0 %v166_v4 }
  0x17   : > { %v143_v0 = vld [vmem:[%s141_s25 + $0x1] sm:$0xff] }
  0x18   : > { %v145_v1 = vld [vmem:[%s141_s25 + $0x3] sm:$0xff]  ;;  %147 = vrot.lane.b32.xlu0 %v143_v0, %s388_s26  ;;  %186 = vmatpush.msra.mxu0 %v165_v5  ;;  %s207_s26 = sshll.u32 %s136_s24, 4  ;;  %s208_s26 = int_to_ptr.vmem [resolvable:$true] %s207_s26 }
  0x19   : > { %155 = vrot.lane.b32.xlu1 %v145_v1, %s389_s27  ;;  %v144_v2 = vld [vmem:[%s141_s25 + $0x2] sm:$0xff]  ;;  %s195_s27 = scalar_lea.sflag [#allocation3], %s134_s14 }
  0x1a   : > { %187 = vmatpush.msra.mxu0 %v164_v6  ;;  %v142_v8 = vld [vmem:[%s141_s25] sm:$0xff]  ;;  %s209_s25 = sshll.u32 %s205_s23, 4  ;;  %s210_s25 = int_to_ptr.hbm [resolvable:$true] %s209_s25 }
  0x20   : > { %151 = vrot.lane.b32.xlu0 %v144_v2, %s390_s28  ;;  %s338_s28 = sshra.s32 %s210_s25, 4  ;;  %s339_s28 = int_to_ptr.hbm [resolvable:$true] %s338_s28 }
  0x21   : > { %s340_s29 = scalar_lea.hbm %s339_s28, 8  ;;  %p345_p0 = scmp.lt.s32.totalorder %s339_s28, %s505_s2 }
  0x22   : > { %p341_p11 = scmp.ne.s32.totalorder %s339_s28, %s340_s29  ;;  %p346_p1 = scmp.lt.s32.totalorder %s344_s3, %s340_s29 }
  0x24   : > { %p342_p12 = pnand %p341_p11, %p444_p5  ;;  %p347_p2 = por %p346_p1, %p345_p0 }
  0x26   : > { %p343_p13 = pneg %p342_p12 }
  0x28   : > { %p348_p3 = pnand %p347_p2, %p343_p13 }
  0x8a   : > { %v148_v7 = vpop.permute.xlu0 %147 }
  0x8b   : > { %v156_v9 = vpop.permute.xlu1 %155  ;;  %v159_v10 = vsel %vm158_vm0, %v142_v8, %v148_v7 }
  0x92   : > { %v152_v11 = vpop.permute.xlu0 %151 }
  0x93   : > { %v161_v12 = vsel %vm160_vm1, %v159_v10, %v152_v11 }
  0x94   : > { %v163_v13 = vsel %vm162_vm2, %v161_v12, %v156_v9 }
  0x95   : > { %276 = vmatmul.msk.f32.vlgmr.msra.gmra.mxu0 %vm168_vm3, %v163_v13 }
 0x112   : > { %v189_v14 = vpop.f32.mrf.mxu0 }
 0x113   : > { %193 = vst.msk [vmem:[%s136_s24] sm:$0xff] %vm192_vm4, %v189_v14 }
 0x114   : > { %351 = shalt.err (!%p348_p3)
}
 0x115   : > { %282 = dma.vmem_to_hbm [thread:$0]  (%p444_p5), %s208_s26, 128, %s210_s25, %s195_s27  }
 0x116 PF: > { %p288_p4 = scmp.ge.s32.totalorder %s386_s12, 2  ;;  %s221_s6 = sand.u32 1, %s374_s9  }
 0x117   : > { %s222_s7 = scalar_lea.sflag [#allocation3], %s221_s6 }
 0x118   : > { %p285_p7 = pnand %p288_p4, %p448_p6 }
 0x11a   : > { %p286_p8 = pneg %p285_p7 }
 0x11c   : > { %369 = dma.done.wait (%p286_p8), %s222_s7, 128  }
 0x11d   : > { %371 = vsyncadd (%p286_p8), %s222_s7, 4294967168  ;;  %p12_p9 = scmp.ge.s32.totalorder %s431_s15, 4   ;;  %s508_s9 = smov %s378_s10 }
 0x11e   : > { %s509_s10 = smov %s382_s11  ;;  %s510_s11 = smov %s442_s18 }
 0x11f   : > { %s511_s12 = smov %s431_s15  ;;  %14 = sbr.rel (!%p12_p9) target bundleno = 3 (0x3), region = 63 }
 0x124   :  { %228 = vsyncpa [#allocation3], 1 }
 0x125   :  { %230 = vsyncpa [#allocation3 + $0x1], 1 }

</bundles_post_ra>
